<compile_context>
chip_gen: v7x
topology: tpu7x:2x2x1
jax: 0.10.0
libtpu: 0.0.40
codegen_flags: <defaults>
</compile_context>

<pallas_src>
import functools

import jax
import jax.numpy as jnp
from jax.experimental import pallas as pl
from jax.experimental.pallas import tpu as pltpu


def _round_up(x, m):
    return ((x + m - 1) // m) * m


def _vmem_capacity_bytes():
    """Physical per-core VMEM; conservative 64 MiB (v7x per-TC) fallback."""
    try:
        return int(pltpu.get_tpu_info().vmem_capacity_bytes)
    except Exception:
        return 64 * 1024 * 1024


def _model_with_loss_kernel(x_ref, w1_ref, b1_ref, w2_ref, b2_ref,
                            t_ref, pw_ref, out_ref, *,
                            tile_b, n_valid_rows, mask_last_tile, mxu_dtype):
    # ---- model forward: Linear -> ReLU -> Linear (MXU, f32 accumulation) ----
    # Signal streams in its stored dtype; in-kernel VPU cast to bf16 for the
    # MXU (no extra wrapper-side HBM round trip of the largest operand).
    x = x_ref[...].astype(mxu_dtype)                               # (TB, D)
    h = jnp.dot(x, w1_ref[...],
                preferred_element_type=jnp.float32) + b1_ref[...]  # (TB, H) f32
    h = jnp.maximum(h, 0.0)                                        # ReLU
    logits = jnp.dot(h.astype(mxu_dtype), w2_ref[...],
                     preferred_element_type=jnp.float32) + b2_ref[...]  # (TB, C)

    # Model output is 2-D here, so torch.squeeze(o, dim=1) branch is a no-op.

    # ---- BCEWithLogitsLoss(pos_weight, reduction='mean'), stable form ----
    #   lw = 1 + (pos_weight - 1) * y
    #   l  = (1 - y) * x + lw * (log(1 + exp(-|x|)) + max(-x, 0))
    # (log(1+z), z = exp(-|x|) in (0, 1], is cancellation-free; equivalent to
    #  torch's log1p form to ~1e-7 absolute.)
    y = t_ref[...].astype(jnp.float32)                             # {0,1} exact
    pw = pw_ref[...]                                               # (1, C) f32
    log_weight = 1.0 + (pw - 1.0) * y
    softplus = jnp.log(1.0 + jnp.exp(-jnp.abs(logits))) + jnp.maximum(-logits, 0.0)
    loss_el = (1.0 - y) * logits + log_weight * softplus           # (TB, C) f32

    # Per-tile partial column sum into an independent output block
    # (no carried accumulator -> grid can run parallel across TensorCores).
    out_ref[...] = jnp.sum(loss_el, axis=0, keepdims=True)[None]   # (1, 1, C)

    if mask_last_tile:
        # Only the final tile can contain rows past the real batch; redo its
        # partial sum with padding rows zeroed.  Gated so every other tile
        # skips the iota/compare/select entirely.
        i = pl.program_id(0)

        @pl.when(i == pl.num_programs(0) - 1)
        def _mask_tail():
            rows = jax.lax.broadcasted_iota(jnp.int32, (tile_b, 1), 0) + i * tile_b
            masked = jnp.where(rows < n_valid_rows, loss_el, 0.0)
            out_ref[...] = jnp.sum(masked, axis=0, keepdims=True)[None]


def model_with_loss(signal, target, params, pos_weight, *,
                    tile_b=1024, mxu_dtype=jnp.bfloat16):
    """Scalar BCE-with-logits loss of the MLP classifier, fused in one kernel.

    `signal` and `target` are streamed in their stored dtypes (pass targets as
    int8 {0,1} for minimal HBM traffic); all casts happen in-kernel.
    bf16 matmul inputs / f32 accumulation: matches the bf16 JAX reference, not
    bit-exact vs an all-f32 PyTorch run (expected tolerance ~1e-3 relative on
    logits, far tighter on the mean loss).
    """
    w1, b1, w2, b2 = params
    B, D = signal.shape
    _, C = target.shape
    H = w1.shape[1]

    # Small params: cast/reshape once in the wrapper (negligible traffic).
    w1c = jnp.asarray(w1, mxu_dtype)
    w2c = jnp.asarray(w2, mxu_dtype)
    b1c = jnp.asarray(b1, jnp.float32).reshape(1, H)
    b2c = jnp.asarray(b2, jnp.float32).reshape(1, C)
    pwc = jnp.asarray(pos_weight, jnp.float32).reshape(1, C)

    x_b = jnp.dtype(signal.dtype).itemsize
    t_b = jnp.dtype(target.dtype).itemsize
    w_b = jnp.dtype(mxu_dtype).itemsize

    def vmem_budget(tb):
        b = 0
        b += 2 * tb * D * x_b                    # signal tile, double-buffered
        b += 2 * tb * C * t_b                    # target tile, double-buffered
        b += 2 * (D * H + H * C) * w_b           # resident weights (2 buffers)
        b += 2 * (H + 3 * C) * 4                 # b1, b2, pos_weight, out block
        b += tb * (H + 4 * C) * 4                # live f32 intermediates
        return b

    cap = _vmem_capacity_bytes()
    # tile_b: multiple of 32 (int8 sublane packing), shrunk until the working
    # set fits comfortably on this chip's VMEM (v5e/v6e 128 MiB, v7x 64 MiB).
    tile_b = max(32, _round_up(min(tile_b, B), 32))
    while tile_b > 32 and vmem_budget(tile_b) > int(cap * 0.8):
        tile_b = max(32, _round_up(tile_b // 2, 32))

    num_tiles = pl.cdiv(B, tile_b)
    mask_last_tile = (B % tile_b) != 0   # ragged batch: mask in-kernel, no jnp.pad copy
    vmem_limit = int(min(max(vmem_budget(tile_b) * 5 // 4, 32 * 2**20),
                         cap - 2 * 2**20))

    kernel = functools.partial(
        _model_with_loss_kernel,
        tile_b=tile_b,
        n_valid_rows=B,
        mask_last_tile=mask_last_tile,
        mxu_dtype=mxu_dtype,
    )

    bytes_accessed = (B * D * x_b + B * C * t_b +
                      (D * H + H * C) * w_b + (H + 2 * C) * 4 +
                      num_tiles * C * 4)
    cost = pl.CostEstimate(flops=2 * B * (D * H + H * C),
                           transcendentals=2 * B * C,
                           bytes_accessed=bytes_accessed)

    partials = pl.pallas_call(
        kernel,
        grid=(num_tiles,),
        in_specs=[
            pl.BlockSpec((tile_b, D), lambda i: (i, 0)),   # signal tile (streamed)
            pl.BlockSpec((D, H), lambda i: (0, 0)),        # w1 (VMEM resident)
            pl.BlockSpec((1, H), lambda i: (0, 0)),        # b1 (resident)
            pl.BlockSpec((H, C), lambda i: (0, 0)),        # w2 (resident)
            pl.BlockSpec((1, C), lambda i: (0, 0)),        # b2 (resident)
            pl.BlockSpec((tile_b, C), lambda i: (i, 0)),   # target tile (streamed)
            pl.BlockSpec((1, C), lambda i: (0, 0)),        # pos_weight (resident)
        ],
        out_specs=pl.BlockSpec((1, 1, C), lambda i: (i, 0, 0)),
        out_shape=jax.ShapeDtypeStruct((num_tiles, 1, C), jnp.float32),
        compiler_params=pltpu.CompilerParams(
            dimension_semantics=("parallel",),
            vmem_limit_bytes=vmem_limit),
        cost_estimate=cost,
    )(signal, w1c, b1c, w2c, b2c, target, pwc)

    # reduction='mean' over the true (unpadded) B*C elements; tiny XLA reduce.
    return jnp.sum(partials) * (1.0 / (B * C))


def reference_loss(signal, target, params, pos_weight, mxu_dtype=jnp.bfloat16):
    """Pure-JAX reference (same bf16 matmul inputs / f32 accumulation)."""
    w1, b1, w2, b2 = params
    x = signal.astype(mxu_dtype)
    h = jnp.maximum(
        jnp.dot(x, w1.astype(mxu_dtype),
                preferred_element_type=jnp.float32) + b1.reshape(1, -1), 0.0)
    logits = jnp.dot(h.astype(mxu_dtype), w2.astype(mxu_dtype),
                     preferred_element_type=jnp.float32) + b2.reshape(1, -1)
    y = target.astype(jnp.float32)
    pw = pos_weight.reshape(1, -1).astype(jnp.float32)
    lw = 1.0 + (pw - 1.0) * y
    l = (1.0 - y) * logits + lw * (jnp.log1p(jnp.exp(-jnp.abs(logits))) +
                                   jnp.maximum(-logits, 0.0))
    return jnp.mean(l)


if __name__ == "__main__":
    # Small shapes; B deliberately NOT a multiple of the tile to exercise the
    # in-kernel tail mask, and > 1 tile to exercise the parallel partial sums.
    B, D, H, C = 300, 32, 64, 16

    key = jax.random.PRNGKey(0)
    k_sig, k_tgt, k_w1, k_b1, k_w2, k_b2, k_pw = jax.random.split(key, 7)

    signal = jax.random.normal(k_sig, (B, D), dtype=jnp.float32)
    # Targets stored as int8 {0,1}: streamed directly (1 B/elt), cast in-kernel.
    target = jax.random.bernoulli(k_tgt, 0.3, (B, C)).astype(jnp.int8)

    # Deterministic synthetic parameter init (no checkpoint load).
    w1 = jax.random.normal(k_w1, (D, H), dtype=jnp.float32) * (1.0 / jnp.sqrt(D))
    b1 = jax.random.normal(k_b1, (H,), dtype=jnp.float32) * 0.01
    w2 = jax.random.normal(k_w2, (H, C), dtype=jnp.float32) * (1.0 / jnp.sqrt(H))
    b2 = jax.random.normal(k_b2, (C,), dtype=jnp.float32) * 0.01
    pos_weight = jax.random.uniform(k_pw, (C,), dtype=jnp.float32,
                                    minval=0.5, maxval=2.0)
    params = (w1, b1, w2, b2)

    # tile_b=128 -> 3 batch tiles with a ragged last tile.
    loss = model_with_loss(signal, target, params, pos_weight, tile_b=128)
    loss = jax.block_until_ready(loss)

    ref = reference_loss(signal, target, params, pos_weight)
    assert jnp.allclose(loss, ref, atol=1e-5, rtol=1e-4), (loss, ref)

    print("KERNEL_OK")
</pallas_src>

<mosaic_0001>
module attributes {stable_mosaic.version = 11 : i64} {
  func.func @_model_with_loss_kernel(%arg0: i32, %arg1: memref<128x32xf32, #tpu.memory_space<vmem>>, %arg2: memref<32x64xbf16, #tpu.memory_space<vmem>>, %arg3: memref<1x64xf32, #tpu.memory_space<vmem>>, %arg4: memref<64x16xbf16, #tpu.memory_space<vmem>>, %arg5: memref<1x16xf32, #tpu.memory_space<vmem>>, %arg6: memref<128x16xi8, #tpu.memory_space<vmem>>, %arg7: memref<1x16xf32, #tpu.memory_space<vmem>>, %arg8: memref<1x1x16xf32, #tpu.memory_space<vmem>>) attributes {dimension_semantics = [#tpu.dimension_semantics<parallel>], iteration_bounds = array<i64: 3>, scalar_prefetch = 0 : i64, scratch_operands = 0 : i64, tpu.core_type = #tpu.core_type<tc>, window_params = [{transform_indices = @transform_0, window_bounds = array<i64: 128, 32>}, {pipeline_mode = #tpu.pipeline_mode<synchronous>, transform_indices = @transform_1, window_bounds = array<i64: 32, 64>}, {pipeline_mode = #tpu.pipeline_mode<synchronous>, transform_indices = @transform_2, window_bounds = array<i64: 1, 64>}, {pipeline_mode = #tpu.pipeline_mode<synchronous>, transform_indices = @transform_3, window_bounds = array<i64: 64, 16>}, {pipeline_mode = #tpu.pipeline_mode<synchronous>, transform_indices = @transform_4, window_bounds = array<i64: 1, 16>}, {transform_indices = @transform_5, window_bounds = array<i64: 128, 16>}, {pipeline_mode = #tpu.pipeline_mode<synchronous>, transform_indices = @transform_6, window_bounds = array<i64: 1, 16>}, {transform_indices = @transform_7, window_bounds = array<i64: 1, 1, 16>}]} {
    %c0 = arith.constant 0 : index
    %c0_0 = arith.constant 0 : index
    %0 = vector.load %arg1[%c0, %c0_0] : memref<128x32xf32, #tpu.memory_space<vmem>>, vector<128x32xf32>
    %1 = arith.truncf %0 : vector<128x32xf32> to vector<128x32xbf16>
    %c0_1 = arith.constant 0 : index
    %c0_2 = arith.constant 0 : index
    %2 = vector.load %arg2[%c0_1, %c0_2] : memref<32x64xbf16, #tpu.memory_space<vmem>>, vector<32x64xbf16>
    %cst = arith.constant dense<0.000000e+00> : vector<128x64xf32>
    %3 = tpu.matmul %1, %2, %cst {dimension_numbers = #tpu.dot_dimension_numbers<[1], [0], [0], [1], [0, 0, 1, 1], [], []>} : vector<128x32xbf16>, vector<32x64xbf16>, vector<128x64xf32> -> vector<128x64xf32>
    %c0_3 = arith.constant 0 : index
    %c0_4 = arith.constant 0 : index
    %4 = vector.load %arg3[%c0_3, %c0_4] : memref<1x64xf32, #tpu.memory_space<vmem>>, vector<1x64xf32>
    %5 = vector.broadcast %4 : vector<1x64xf32> to vector<128x64xf32>
    %6 = arith.addf %3, %5 : vector<128x64xf32>
    %cst_5 = arith.constant 0.000000e+00 : f32
    %7 = vector.broadcast %cst_5 : f32 to vector<128x64xf32>
    %8 = arith.maximumf %6, %7 : vector<128x64xf32>
    %9 = arith.truncf %8 : vector<128x64xf32> to vector<128x64xbf16>
    %c0_6 = arith.constant 0 : index
    %c0_7 = arith.constant 0 : index
    %10 = vector.load %arg4[%c0_6, %c0_7] : memref<64x16xbf16, #tpu.memory_space<vmem>>, vector<64x16xbf16>
    %cst_8 = arith.constant dense<0.000000e+00> : vector<128x16xf32>
    %11 = tpu.matmul %9, %10, %cst_8 {dimension_numbers = #tpu.dot_dimension_numbers<[1], [0], [0], [1], [0, 0, 1, 1], [], []>} : vector<128x64xbf16>, vector<64x16xbf16>, vector<128x16xf32> -> vector<128x16xf32>
    %c0_9 = arith.constant 0 : index
    %c0_10 = arith.constant 0 : index
    %12 = vector.load %arg5[%c0_9, %c0_10] : memref<1x16xf32, #tpu.memory_space<vmem>>, vector<1x16xf32>
    %13 = vector.broadcast %12 : vector<1x16xf32> to vector<128x16xf32>
    %14 = arith.addf %11, %13 : vector<128x16xf32>
    %c0_11 = arith.constant 0 : index
    %c0_12 = arith.constant 0 : index
    %15 = vector.load %arg6[%c0_11, %c0_12] : memref<128x16xi8, #tpu.memory_space<vmem>>, vector<128x16xi8>
    %16 = arith.sitofp %15 : vector<128x16xi8> to vector<128x16xf32>
    %c0_13 = arith.constant 0 : index
    %c0_14 = arith.constant 0 : index
    %17 = vector.load %arg7[%c0_13, %c0_14] : memref<1x16xf32, #tpu.memory_space<vmem>>, vector<1x16xf32>
    %cst_15 = arith.constant 1.000000e+00 : f32
    %18 = vector.broadcast %cst_15 : f32 to vector<1x16xf32>
    %19 = arith.subf %17, %18 : vector<1x16xf32>
    %20 = vector.broadcast %19 : vector<1x16xf32> to vector<128x16xf32>
    %21 = arith.mulf %20, %16 : vector<128x16xf32>
    %cst_16 = arith.constant 1.000000e+00 : f32
    %22 = vector.broadcast %cst_16 : f32 to vector<128x16xf32>
    %23 = arith.addf %22, %21 : vector<128x16xf32>
    %24 = math.absf %14 : vector<128x16xf32>
    %cst_17 = arith.constant 0.000000e+00 : f32
    %25 = vector.broadcast %cst_17 : f32 to vector<128x16xf32>
    %26 = arith.subf %25, %24 : vector<128x16xf32>
    %27 = math.exp %26 : vector<128x16xf32>
    %cst_18 = arith.constant 1.000000e+00 : f32
    %28 = vector.broadcast %cst_18 : f32 to vector<128x16xf32>
    %29 = arith.addf %28, %27 : vector<128x16xf32>
    %30 = math.log %29 : vector<128x16xf32>
    %cst_19 = arith.constant 0.000000e+00 : f32
    %31 = vector.broadcast %cst_19 : f32 to vector<128x16xf32>
    %32 = arith.subf %31, %14 : vector<128x16xf32>
    %cst_20 = arith.constant 0.000000e+00 : f32
    %33 = vector.broadcast %cst_20 : f32 to vector<128x16xf32>
    %34 = arith.maximumf %32, %33 : vector<128x16xf32>
    %35 = arith.addf %30, %34 : vector<128x16xf32>
    %cst_21 = arith.constant 1.000000e+00 : f32
    %36 = vector.broadcast %cst_21 : f32 to vector<128x16xf32>
    %37 = arith.subf %36, %16 : vector<128x16xf32>
    %38 = arith.mulf %37, %14 : vector<128x16xf32>
    %39 = arith.mulf %23, %35 : vector<128x16xf32>
    %40 = arith.addf %38, %39 : vector<128x16xf32>
    %cst_22 = arith.constant dense<0.000000e+00> : vector<16xf32>
    %41 = vector.multi_reduction <add>, %40, %cst_22 [0] : vector<128x16xf32> to vector<16xf32>
    %42 = vector.shape_cast %41 : vector<16xf32> to vector<1x16xf32>
    %43 = vector.shape_cast %42 : vector<1x16xf32> to vector<1x1x16xf32>
    %c0_23 = arith.constant 0 : index
    %c0_24 = arith.constant 0 : index
    %c0_25 = arith.constant 0 : index
    %44 = vector.load %arg8[%c0_23, %c0_24, %c0_25] : memref<1x1x16xf32, #tpu.memory_space<vmem>>, vector<1x1x16xf32>
    tpu.vector_store %arg8[%c0_23, %c0_24, %c0_25], %43 {strides = array<i32>} : memref<1x1x16xf32, #tpu.memory_space<vmem>>, vector<1x1x16xf32>,
    %c2_i32 = arith.constant 2 : i32
    %45 = arith.cmpi eq, %arg0, %c2_i32 : i32
    %46 = arith.extui %45 : i1 to i32
    %c0_i32 = arith.constant 0 : i32
    %47 = arith.cmpi ne, %46, %c0_i32 : i32
    scf.if %47 {
      %48 = tpu.iota {dimensions = array<i32: 0>} : vector<128x1xi32>
      %c128_i32 = arith.constant 128 : i32
      %49 = arith.muli %arg0, %c128_i32 : i32
      %50 = vector.broadcast %49 : i32 to vector<128x1xi32>
      %51 = arith.addi %48, %50 : vector<128x1xi32>
      %c300_i32 = arith.constant 300 : i32
      %52 = vector.broadcast %c300_i32 : i32 to vector<128x1xi32>
      %53 = arith.cmpi slt, %51, %52 : vector<128x1xi32>
      %cst_26 = arith.constant 0.000000e+00 : f32
      %54 = vector.shape_cast %53 : vector<128x1xi1> to vector<128x1xi1>
      %55 = vector.broadcast %54 : vector<128x1xi1> to vector<128x16xi1>
      %56 = vector.broadcast %cst_26 : f32 to vector<128x16xf32>
      %57 = arith.select %55, %40, %56 : vector<128x16xi1>, vector<128x16xf32>
      %cst_27 = arith.constant dense<0.000000e+00> : vector<16xf32>
      %58 = vector.multi_reduction <add>, %57, %cst_27 [0] : vector<128x16xf32> to vector<16xf32>
      %59 = vector.shape_cast %58 : vector<16xf32> to vector<1x16xf32>
      %60 = vector.shape_cast %59 : vector<1x16xf32> to vector<1x1x16xf32>
      %c0_28 = arith.constant 0 : index
      %c0_29 = arith.constant 0 : index
      %c0_30 = arith.constant 0 : index
      %61 = vector.load %arg8[%c0_28, %c0_29, %c0_30] : memref<1x1x16xf32, #tpu.memory_space<vmem>>, vector<1x1x16xf32>
      tpu.vector_store %arg8[%c0_28, %c0_29, %c0_30], %60 {strides = array<i32>} : memref<1x1x16xf32, #tpu.memory_space<vmem>>, vector<1x1x16xf32>,
    } else {
    }
    return
  }
  func.func @transform_0(%arg0: i32) -> (i32, i32) {
    %c0_i32 = arith.constant 0 : i32
    %c0_i32_0 = arith.constant 0 : i32
    return %arg0, %c0_i32 : i32, i32
  }
  func.func @transform_1(%arg0: i32) -> (i32, i32) {
    %c0_i32 = arith.constant 0 : i32
    %c0_i32_0 = arith.constant 0 : i32
    %c0_i32_1 = arith.constant 0 : i32
    return %c0_i32, %c0_i32_0 : i32, i32
  }
  func.func @transform_2(%arg0: i32) -> (i32, i32) {
    %c0_i32 = arith.constant 0 : i32
    %c0_i32_0 = arith.constant 0 : i32
    %c0_i32_1 = arith.constant 0 : i32
    return %c0_i32, %c0_i32_0 : i32, i32
  }
  func.func @transform_3(%arg0: i32) -> (i32, i32) {
    %c0_i32 = arith.constant 0 : i32
    %c0_i32_0 = arith.constant 0 : i32
    %c0_i32_1 = arith.constant 0 : i32
    return %c0_i32, %c0_i32_0 : i32, i32
  }
  func.func @transform_4(%arg0: i32) -> (i32, i32) {
    %c0_i32 = arith.constant 0 : i32
    %c0_i32_0 = arith.constant 0 : i32
    %c0_i32_1 = arith.constant 0 : i32
    return %c0_i32, %c0_i32_0 : i32, i32
  }
  func.func @transform_5(%arg0: i32) -> (i32, i32) {
    %c0_i32 = arith.constant 0 : i32
    %c0_i32_0 = arith.constant 0 : i32
    return %arg0, %c0_i32 : i32, i32
  }
  func.func @transform_6(%arg0: i32) -> (i32, i32) {
    %c0_i32 = arith.constant 0 : i32
    %c0_i32_0 = arith.constant 0 : i32
    %c0_i32_1 = arith.constant 0 : i32
    return %c0_i32, %c0_i32_0 : i32, i32
  }
  func.func @transform_7(%arg0: i32) -> (i32, i32, i32) {
    %c0_i32 = arith.constant 0 : i32
    %c0_i32_0 = arith.constant 0 : i32
    %c0_i32_1 = arith.constant 0 : i32
    return %arg0, %c0_i32, %c0_i32_0 : i32, i32, i32
  }
}

</mosaic_0001>

<bundles_post_ra>
// kernel: tpu_custom_call.1
= control target key start
LH: loop header
LB: loop body
LE: loop exit
PB: predicated region body
PF: predicated region fallthrough
CT: control target
= control target key end

     0   :  { %12 = vsyncpa [#allocation3], 0  ;;  %s2189_s0 = inlined_call_operand.vmem [shape: f32[300,32], index: 0, kind: input, shape index: {}]   ;;  %s2190_s1 = inlined_call_operand.vmem [shape: bf16[32,64], index: 1, kind: input, shape index: {}]   ;;  %s2191_s2 = inlined_call_operand.vmem [shape: f32[1,64], index: 2, kind: input, shape index: {}]   ;;  %s2192_s3 = inlined_call_operand.vmem [shape: bf16[64,16], index: 3, kind: input, shape index: {}]   ;;  %s2193_s4 = inlined_call_operand.vmem [shape: f32[1,16], index: 4, kind: input, shape index: {}]   ;;  %s2194_s5 = inlined_call_operand.vmem [shape: s8[300,16], index: 5, kind: input, shape index: {}]   ;;  %s2195_s6 = inlined_call_operand.vmem [shape: f32[1,16], index: 6, kind: input, shape index: {}]   ;;  %s2196_s7 = inlined_call_operand.hbm [shape: f32[3,1,16], index: 7, kind: output, shape index: {}]  }
   0x1   :  { %14 = vsyncpa [#allocation3 + $0x1], 0  ;;  %s1625_s24 = smov 0   ;;  %s1627_s25 = smov 0  }
   0x2   :  { %s1629_s26 = smov 0   ;;  %s1631_s27 = smov 0  }
   0x3 LB: > { %s1646_s28 = sadd.s32 4294967295, %s1582_s27   ;;  %s1268_s29 = sadd.s32 4294967294, %s1582_s27   ;;  %s1582_s27 = sphi %s1631_s27, %s2225_s27   ;;  %s1578_s26 = sphi %s1629_s26, %s2224_s26   ;;  %s1574_s25 = sphi %s1627_s25, %s2223_s25   ;;  %s1570_s24 = sphi %s1625_s24, %s2222_s24  }
   0x4   : > { %s1650_s30 = sadd.s32 1, %s1582_s27   ;;  %s184_s8 = sadd.s32 1, %s1578_s26 }
   0x5   : > { %s181_s9 = ssub.s32 %s1582_s27, %s1650_s30  ;;  %p194_p0 = scmp.ne.s32.totalorder %s1578_s26, %s1574_s25 }
   0x6   : > { %p182_p1 = scmp.eq.s32.totalorder %s181_s9, 0  ;;  %p195_p2 = scmp.eq.s32.totalorder %s1646_s28, 2 }
   0x7   : > { %p200_p3 = scmp.ne.s32.totalorder %s1574_s25, %s1570_s24  ;;  %p201_p4 = scmp.eq.s32.totalorder %s1268_s29, 2 }
   0x8   : > { %s1661_s10 = scalar_select %p182_p1, %s1578_s26, %s184_s8  }
   0x9   : > { %p1663_p5 = por %p195_p2, %p194_p0  ;;  %p1667_p6 = por %p201_p4, %p200_p3 }
   0xa   : > { %p1271_p7 = scmp.ge.s32.totalorder %s1582_s27, 1  ;;  %p268_p8 = scmp.lt.s32.totalorder %s1582_s27, 4 }
   0xc   : > { %p269_p9 = pnand %p1271_p7, %p268_p8 }
   0xe   : > { %272 = sbr.rel (%p269_p9) target bundleno = 628 (0x274), region = 48 }
  0x15   : > { %v1450_v0 = vld [vmem:[%s2190_s1] sm:$0xff]   ;;  %s1677_s15 = sshll.u32 %s1646_s28, 4  ;;  %v1451_v1 = vld [vmem:[%s2190_s1 + $0x8] sm:$0xff]   ;;  %vm388_vm0 = vcmask 261120   ;;  %v1454_v28 = vld [vmem:[%s2192_s3 + $0x10] sm:$0xff]   ;;  %vm573_vm1 = vcmask 523264  }
  0x16   : > { %p317_p10 = scmp.lt.s32.totalorder %s1677_s15, 37  ;;  %1360 = vmatprep.subr.bf16.mxu0 %v1450_v0  ;;  %v1452_v2 = vld [vmem:[%s2192_s3] sm:$0xff]   ;;  %v1453_v3 = vld [vmem:[%s2192_s3 + $0x8] sm:$0xff]   ;;  %v1455_v29 = vld [vmem:[%s2192_s3 + $0x18] sm:$0xff]   ;;  %vm1007_vm2 = vcmask 130048   ;;  %s310_s14 = sand.u32 1, %s1574_s25  }
  0x17   : > { %1361 = vmatpush3.bf16.msra.mxu0 %v1450_v0  ;;  %1380 = vmatprep.subr.bf16.mxu1 %v1452_v2  ;;  %v1276_v30 = vld [vmem:[%s2191_s2] ss:$0 sm:$0xff]  ;;  %vm1045_vm3 = vcmask 122880   ;;  %s2072_s16 = scalar_lea.vmem [#allocation2], %s310_s14  ;;  %p1301_p11 = scmp.ne.s32.totalorder %s1646_s28, 2 }
  0x18   : > { %s1687_s20 = scalar_select %p317_p10, %s1677_s15, 37  ;;  %1362 = vmatprep.subr.bf16.mxu0 %v1451_v1  ;;  %1381 = vmatpush3.bf16.msra.mxu1 %v1452_v2 }
  0x19   : > { %1382 = vmatprep.subr.bf16.mxu1 %v1453_v3  ;;  %s1302_s17 = sshll.u32 (!%p1301_p11), %s1646_s28, 7 }
  0x1a   : > { %s1273_s23 = sshll.u32 %s1687_s20, 3  ;;  %s1275_s21 = sshll.u32 %s1687_s20, 1 }
  0x1b   : > { %s1696_s9 = scalar_lea.vmem %s2189_s0, %s1273_s23  ;;  %1363 = vmatpush3.bf16.msra.mxu0 %v1451_v1  ;;  %s334_s29 = scalar_lea.vmem %s2194_s5, %s1275_s21 }
  0x1c   : > { %v341_v4 = vld [vmem:[%s1696_s9] sm:$0xff]  ;;  %v342_v5 = vld [vmem:[%s1696_s9 + $0x8] sm:$0xff]  ;;  %v343_v6 = vld [vmem:[%s1696_s9 + $0x10] sm:$0xff]  ;;  %1383 = vmatpush3.bf16.msra.mxu1 %v1453_v3 }
  0x1d   : > { %v357_v7 = vpack.c.bf16 %v342_v5, %v341_v4  ;;  %v344_v8 = vld [vmem:[%s1696_s9 + $0x18] sm:$0xff]  ;;  %v345_v9 = vld [vmem:[%s1696_s9 + $0x20] sm:$0xff]  ;;  %v346_v10 = vld [vmem:[%s1696_s9 + $0x28] sm:$0xff]  ;;  %1384 = vmatprep.subr.bf16.mxu1 %v1454_v28 }
  0x1e   : > { %v358_v11 = vpack.c.bf16 %v344_v8, %v343_v6  ;;  %v359_v12 = vpack.c.bf16 %v346_v10, %v345_v9  ;;  %v347_v13 = vld [vmem:[%s1696_s9 + $0x30] sm:$0xff]  ;;  %v348_v14 = vld [vmem:[%s1696_s9 + $0x38] sm:$0xff]  ;;  %v349_v15 = vld [vmem:[%s1696_s9 + $0x40] sm:$0xff] }
  0x1f   : > { %1364 = vmatprep.mubr.msk.bf16.mxu0 %vm388_vm0, %v357_v7  ;;  %v350_v16 = vld [vmem:[%s1696_s9 + $0x48] sm:$0xff]  ;;  %v360_v17 = vpack.c.bf16 %v348_v14, %v347_v13  ;;  %v351_v19 = vld [vmem:[%s1696_s9 + $0x50] sm:$0xff]  ;;  %v352_v20 = vld [vmem:[%s1696_s9 + $0x58] sm:$0xff] }
  0x20   : > { %1365 = vmatmul.mubr.msk.bf16.vlgmr.msra.gmra.mrb[0].mxu0 %vm388_vm0, %v358_v11  ;;  %v361_v18 = vpack.c.bf16 %v350_v16, %v349_v15  ;;  %v353_v21 = vld [vmem:[%s1696_s9 + $0x60] sm:$0xff]  ;;  %v354_v22 = vld [vmem:[%s1696_s9 + $0x68] sm:$0xff]  ;;  %v362_v23 = vpack.c.bf16 %v352_v20, %v351_v19  ;;  %v355_v25 = vld [vmem:[%s1696_s9 + $0x70] sm:$0xff]  ;;  %1385 = vmatpush3.bf16.msra.mxu1 %v1454_v28 }
  0x21   : > { %1368 = vmatprep.mubr.msk.bf16.mxu0 %vm388_vm0, %v359_v12  ;;  %v363_v24 = vpack.c.bf16 %v354_v22, %v353_v21  ;;  %v356_v26 = vld [vmem:[%s1696_s9 + $0x78] sm:$0xff]  ;;  %1386 = vmatprep.subr.bf16.mxu1 %v1455_v29 }
  0x22   : > { %v364_v27 = vpack.c.bf16 %v356_v26, %v355_v25  ;;  %v743_v25 = vld [vmem:[%s2195_s6] sm:$0x1]  ;;  %v1404_v26 = vld [vmem:[%s334_s29 + $0x4] sm:$0xff]  }
  0x23   : > { %v1300_v28 = vadd.f32 -1.0, %v743_v25 }
  0x24   : > { %1387 = vmatpush3.bf16.msra.mxu1 %v1455_v29 }
  0x28   : > { %1369 = vmatmul.mubr.msk.bf16.gmra.mrb[4].mxu0 %vm388_vm0, %v360_v17 }
  0x29   : > { %1372 = vmatprep.mubr.msk.bf16.mxu0 %vm388_vm0, %v361_v18 }
  0x30   : > { %1373 = vmatmul.mubr.msk.bf16.gmra.mrb[8].mxu0 %vm388_vm0, %v362_v23  ;;  %v746_v23 = vlaneseq }
  0x31   : > { %1376 = vmatprep.mubr.msk.bf16.mxu0 %vm388_vm0, %v363_v24 }
  0x32   : > { %v1743_v24 = vshrl.u32 %v746_v23, 7 }
  0x34   : > { %2206 = vst [vmem:[#allocation5_spill] sm:$0xff] %v1743_v24  ;;  %v748_v29 = vsub.s32 0, %v1743_v24 }
  0x38   : > { %1377 = vmatmul.mubr.msk.bf16.gmra.mrb[12].mxu0 %vm388_vm0, %v364_v27  ;;  %v1748_v27 = vld [vmem:[%s334_s29] ss:$28 sps:$4 sm:$0xff]  }
  0x39   : > { %2207 = vst [vmem:[#allocation6_spill] sm:$0xff] %v1748_v27 }
  0xf3   : > { %v1366_v31 = vpop.f32.mrb[0].mxu0 }
  0xf4   : > { %v456_v32 = vadd.f32 %v1366_v31, %v1276_v30  ;;  %v447_v33 = vpop.f32.mrb[1].mxu0  ;;  %v1308_v31 = vunpack.c.0.s8 %v1748_v27 }
  0xf5   : > { %v448_v34 = vadd.f32 %v1276_v30, %v447_v33  ;;  %v1367_v35 = vpop.f32.mrb[2].mxu0  ;;  %v1309_v33 = vunpack.c.1.s8 %v1748_v27 }
  0xf6   : > { %v459_v36 = vadd.f32 %v1367_v35, %v1276_v30  ;;  %v450_v37 = vpop.f32.mrb[3].mxu0  ;;  %v512_v39 = vmax.f32 %v456_v32, 0.0  ;;  %v1313_v32 = vunpack.c.1.s8 %v1404_v26  ;;  %v1753_v35 = vrot.slane %v1300_v28, %v748_v29 }
  0xf7   : > { %v451_v38 = vadd.f32 %v1276_v30, %v450_v37  ;;  %v510_v41 = vmax.f32 %v448_v34, 0.0  ;;  %v1406_v34 = vld [vmem:[%s334_s29 + $0xc] sm:$0xff]   ;;  %v1757_v37 = vld [vmem:[%s334_s29 + $0x14] sm:$0xff]  }
  0xf8   : > { %v513_v40 = vmax.f32 %v459_v36, 0.0  ;;  %2208 = vst [vmem:[#allocation7_spill] sm:$0xff] %v1757_v37 }
  0xf9   : > { %v511_v42 = vmax.f32 %v451_v38, 0.0  ;;  %v1759_v38 = vcvt.s32.f32 %v1308_v31 }
  0xfa   : > { %v527_v43 = vpack.c.bf16 %v513_v40, %v512_v39  ;;  %v1761_v39 = vcvt.s32.f32 %v1313_v32  ;;  %v1320_v40 = vunpack.c.0.s8 %v1406_v34 }
  0xfb   : > { %v1370_v44 = vpop.f32.mrb[4].mxu0  ;;  %v526_v45 = vpack.c.bf16 %v511_v42, %v510_v41  ;;  %v1763_v41 = vcvt.s32.f32 %v1309_v33  ;;  %v1316_v42 = vunpack.c.2.s8 %v1404_v26 }
  0xfc   : > { %v472_v46 = vadd.f32 %v1370_v44, %v1276_v30  ;;  %v463_v47 = vpop.f32.mrb[5].mxu0  ;;  %v1768_v44 = vld [vmem:[%s2193_s4] ss:$0 sm:$0xff]  ;;  %v754_v29 = vmul.f32 %v1753_v35, %v1761_v39 }
  0xfd   : > { %v464_v48 = vadd.f32 %v1276_v30, %v463_v47  ;;  %v1371_v49 = vpop.f32.mrb[6].mxu0  ;;  %1388 = vmatprep.mubr.msk.bf16.mxu1 %vm573_vm1, %v526_v45  ;;  %v1328_v47 = vunpack.c.0.s8 %v1757_v37  ;;  %v752_v33 = vmul.f32 %v1753_v35, %v1763_v41 }
  0xfe   : > { %v475_v50 = vadd.f32 %v1371_v49, %v1276_v30  ;;  %v466_v51 = vpop.f32.mrb[7].mxu0  ;;  %1389 = vmatmul.mubr.msk.bf16.vlgmr.msra.gmra.mrb[0].mxu1 %vm573_vm1, %v527_v43  ;;  %v516_v53 = vmax.f32 %v472_v46, 0.0  ;;  %v1321_v43 = vunpack.c.1.s8 %v1406_v34  ;;  %v1317_v46 = vunpack.c.3.s8 %v1404_v26 }
  0xff   : > { %v467_v52 = vadd.f32 %v1276_v30, %v466_v51  ;;  %v514_v55 = vmax.f32 %v464_v48, 0.0  ;;  %v1324_v49 = vunpack.c.2.s8 %v1406_v34  ;;  %v943_v51 = vsub.f32 1.0, %v1759_v38 }
 0x100   : > { %v517_v54 = vmax.f32 %v475_v50, 0.0 }
 0x101   : > { %v515_v56 = vmax.f32 %v467_v52, 0.0  ;;  %v946_v52 = vsub.f32 1.0, %v1761_v39 }
 0x102   : > { %v529_v57 = vpack.c.bf16 %v517_v54, %v516_v53  ;;  %v1776_v53 = vcvt.s32.f32 %v1320_v40  ;;  %v1325_v54 = vunpack.c.3.s8 %v1406_v34 }
 0x103   : > { %v528_v58 = vpack.c.bf16 %v515_v56, %v514_v55  ;;  %v1374_v59 = vpop.f32.mrb[8].mxu0 }
 0x104   : > { %v488_v60 = vadd.f32 %v1374_v59, %v1276_v30  ;;  %v479_v61 = vpop.f32.mrb[9].mxu0  ;;  %v1784_v59 = vcvt.s32.f32 %v1321_v43  ;;  %v757_v43 = vmul.f32 %v1753_v35, %v1776_v53 }
 0x105   : > { %v480_v62 = vadd.f32 %v1276_v30, %v479_v61  ;;  %v1375_v63 = vpop.f32.mrb[10].mxu0  ;;  %1392 = vmatprep.mubr.msk.bf16.mxu1 %vm573_vm1, %v528_v58  ;;  %v1782_v58 = vcvt.s32.f32 %v1316_v42 }
 0x106   : > { %v491_v0 = vadd.f32 %v1375_v63, %v1276_v30  ;;  %v482_v1 = vpop.f32.mrb[11].mxu0  ;;  %1393 = vmatmul.mubr.msk.bf16.gmra.mrb[4].mxu1 %vm573_vm1, %v529_v57  ;;  %v520_v3 = vmax.f32 %v488_v60, 0.0  ;;  %v1791_v63 = vcvt.s32.f32 %v1317_v46 }
 0x107   : > { %v483_v2 = vadd.f32 %v1276_v30, %v482_v1  ;;  %v518_v5 = vmax.f32 %v480_v62, 0.0 }
 0x108   : > { %v521_v4 = vmax.f32 %v491_v0, 0.0  ;;  %v1793_v0 = vcvt.s32.f32 %v1328_v47  ;;  %v1332_v47 = vunpack.c.2.s8 %v1757_v37 }
 0x109   : > { %v519_v6 = vmax.f32 %v483_v2, 0.0 }
 0x10a   : > { %v531_v7 = vpack.c.bf16 %v521_v4, %v520_v3  ;;  %v1799_v4 = vcvt.s32.f32 %v1324_v49 }
 0x10b   : > { %v530_v8 = vpack.c.bf16 %v519_v6, %v518_v5  ;;  %v1378_v9 = vpop.f32.mrb[12].mxu0  ;;  %v1329_v5 = vunpack.c.1.s8 %v1757_v37 }
 0x10c   : > { %v504_v10 = vadd.f32 %v1378_v9, %v1276_v30  ;;  %v495_v11 = vpop.f32.mrb[13].mxu0  ;;  %v1807_v9 = vcvt.s32.f32 %v1325_v54 }
 0x10d   : > { %v496_v12 = vadd.f32 %v1276_v30, %v495_v11  ;;  %v1379_v13 = vpop.f32.mrb[14].mxu0  ;;  %1396 = vmatprep.mubr.msk.bf16.mxu1 %vm573_vm1, %v530_v8 }
 0x10e   : > { %v507_v14 = vadd.f32 %v1379_v13, %v1276_v30  ;;  %v498_v15 = vpop.f32.mrb[15].mxu0  ;;  %1397 = vmatmul.mubr.msk.bf16.gmra.mrb[8].mxu1 %vm573_vm1, %v531_v7  ;;  %v524_v17 = vmax.f32 %v504_v10, 0.0 }
 0x10f   : > { %v499_v16 = vadd.f32 %v1276_v30, %v498_v15  ;;  %v522_v19 = vmax.f32 %v496_v12, 0.0  ;;  %v1312_v30 = vunpack.c.0.s8 %v1404_v26 }
 0x110   : > { %v525_v18 = vmax.f32 %v507_v14, 0.0 }
 0x111   : > { %v523_v20 = vmax.f32 %v499_v16, 0.0  ;;  %v1755_v36 = vcvt.s32.f32 %v1312_v30 }
 0x112   : > { %v533_v21 = vpack.c.bf16 %v525_v18, %v524_v17 }
 0x113   : > { %v532_v22 = vpack.c.bf16 %v523_v20, %v522_v19  ;;  %v753_v45 = vmul.f32 %v1753_v35, %v1755_v36  ;;  %v945_v48 = vsub.f32 1.0, %v1755_v36 }
 0x115   : > { %1400 = vmatprep.mubr.msk.bf16.mxu1 %vm573_vm1, %v532_v22  ;;  %v1786_v60 = vadd.f32 1.0, %v753_v45  ;;  %v751_v22 = vmul.f32 %v1753_v35, %v1759_v38 }
 0x116   : > { %1401 = vmatmul.mubr.msk.bf16.gmra.mrb[12].mxu1 %vm573_vm1, %v533_v21  ;;  %v1816_v21 = vcvt.s32.f32 %v1329_v5  ;;  %v1848_v5 = vadd.f32 1.0, %v754_v29  ;;  %v759_v29 = vmul.f32 %v1753_v35, %v1799_v4 }
 0x117   : > { %v1835_v49 = vadd.f32 1.0, %v751_v22 }
 0x118   : > { %v1879_v28 = vadd.f32 1.0, %v759_v29 }
 0x1d1   : > { %v1390_v50 = vpop.f32.mrb[0].mxu1 }
 0x1d2   : > { %v1779_v55 = vadd.f32 %v1390_v50, %v1768_v44  ;;  %v632_v56 = vpop.f32.mrb[1].mxu1  ;;  %v755_v50 = vmul.f32 %v1753_v35, %v1782_v58 }
 0x1d3   : > { %v1789_v61 = vadd.f32 %v1768_v44, %v632_v56  ;;  %v1391_v62 = vpop.f32.mrb[2].mxu1 }
 0x1d4   : > { %v785_v1 = vand.u32 2147483647, %v1779_v55  ;;  %v1797_v2 = vadd.f32 %v1391_v62, %v1768_v44  ;;  %v635_v3 = vpop.f32.mrb[3].mxu1  ;;  %v1859_v22 = vadd.f32 1.0, %v755_v50  ;;  %v897_v29 = vsub.f32 0.0, %v1779_v55 }
 0x1d5   : > { %v783_v6 = vand.u32 2147483647, %v1789_v61  ;;  %v1804_v7 = vadd.f32 %v1768_v44, %v635_v3 }
 0x1d6   : > { %v801_v10 = vsub.f32 0.0, %v785_v1  ;;  %v786_v11 = vand.u32 2147483647, %v1797_v2  ;;  %v758_v1 = vmul.f32 %v1753_v35, %v1784_v59  ;;  %v1920_v38 = vmul.f32 %v946_v52, %v1797_v2 }
 0x1d7   : > { %v799_v14 = vsub.f32 0.0, %v783_v6  ;;  %v784_v15 = vand.u32 2147483647, %v1804_v7  ;;  %v1850_v6 = vadd.f32 1.0, %v752_v33 }
 0x1d8   : > { %v819_v18 = vmul.f32 1.442695, %v801_v10  ;;  %v802_v19 = vsub.f32 0.0, %v786_v11  ;;  %v756_v11 = vmul.f32 %v1753_v35, %v1791_v63 }
 0x1d9   : > { %v815_v23 = vmul.f32 1.442695, %v799_v14  ;;  %v800_v25 = vsub.f32 0.0, %v784_v15  ;;  %v1394_v26 = vpop.f32.mrb[4].mxu1  ;;  %v1854_v14 = vadd.f32 1.0, %v757_v43 }
 0x1da   : > { %1456 = vpow2.f32 %v819_v18  ;;  %v821_v30 = vmul.f32 1.442695, %v802_v19  ;;  %v1824_v31 = vadd.f32 %v1394_v26, %v1768_v44  ;;  %v648_v32 = vpop.f32.mrb[5].mxu1  ;;  %v761_v19 = vmul.f32 %v1753_v35, %v1793_v0 }
 0x1db   : > { %1458 = vpow2.f32 %v815_v23  ;;  %v817_v34 = vmul.f32 1.442695, %v800_v25  ;;  %v1829_v40 = vadd.f32 %v1768_v44, %v648_v32  ;;  %v1395_v42 = vpop.f32.mrb[6].mxu1 }
 0x1dc   : > { %1460 = vpow2.f32 %v821_v30  ;;  %v789_v45 = vand.u32 2147483647, %v1824_v31  ;;  %v651_v46 = vpop.f32.mrb[7].mxu1  ;;  %v1841_v62 = vadd.f32 %v1395_v42, %v1768_v44  ;;  %v1864_v30 = vadd.f32 1.0, %v758_v1 }
 0x1dd   : > { %1462 = vpow2.f32 %v817_v34  ;;  %v787_v54 = vand.u32 2147483647, %v1829_v40  ;;  %v1846_v3 = vadd.f32 %v1768_v44, %v651_v46  ;;  %v1869_v42 = vadd.f32 1.0, %v756_v11 }
 0x1de   : > { %v805_v56 = vsub.f32 0.0, %v789_v45  ;;  %v790_v18 = vand.u32 2147483647, %v1841_v62 }
 0x1df   : > { %v803_v10 = vsub.f32 0.0, %v787_v54  ;;  %v788_v25 = vand.u32 2147483647, %v1846_v3 }
 0x1e0   : > { %v827_v15 = vmul.f32 1.442695, %v805_v56  ;;  %v806_v32 = vsub.f32 0.0, %v790_v18  ;;  %v1874_v56 = vadd.f32 1.0, %v761_v19  ;;  %v760_v19 = vmul.f32 %v1753_v35, %v1807_v9 }
 0x1e1   : > { %v823_v23 = vmul.f32 1.442695, %v803_v10  ;;  %v1398_v26 = vpop.f32.mrb[8].mxu1  ;;  %v804_v43 = vsub.f32 0.0, %v788_v25 }
 0x1e2   : > { %1464 = vpow2.f32 %v827_v15  ;;  %v1867_v33 = vadd.f32 %v1398_v26, %v1768_v44  ;;  %v664_v34 = vpop.f32.mrb[9].mxu1  ;;  %v829_v54 = vmul.f32 1.442695, %v806_v32  ;;  %v1877_v15 = vcvt.s32.f32 %v1332_v47 }
 0x1e3   : > { %1466 = vpow2.f32 %v823_v23  ;;  %v1872_v45 = vadd.f32 %v1768_v44, %v664_v34  ;;  %v1399_v46 = vpop.f32.mrb[10].mxu1  ;;  %v762_v23 = vmul.f32 %v1753_v35, %v1816_v21  ;;  %v825_v20 = vmul.f32 1.442695, %v804_v43 }
 0x1e4   : > { %v1457_v50 = vpop.eup %1456  ;;  %v793_v1 = vand.u32 2147483647, %v1867_v33  ;;  %v667_v10 = vpop.f32.mrb[11].mxu1  ;;  %1468 = vpow2.f32 %v829_v54  ;;  %v1888_v8 = vadd.f32 %v1399_v46, %v1768_v44  ;;  %v1905_v46 = vadd.f32 1.0, %v760_v19 }
 0x1e5   : > { %v1459_v18 = vpop.eup %1458  ;;  %v849_v26 = vadd.f32 1.0, %v1457_v50  ;;  %v791_v11 = vand.u32 2147483647, %v1872_v45  ;;  %v1891_v54 = vadd.f32 %v1768_v44, %v667_v10 }
 0x1e6   : > { %v1461_v25 = vpop.eup %1460  ;;  %v847_v34 = vadd.f32 1.0, %v1459_v18  ;;  %v809_v32 = vsub.f32 0.0, %v793_v1  ;;  %v895_v18 = vsub.f32 0.0, %v1789_v61 }
 0x1e7   : > { %v1463_v17 = vpop.eup %1462  ;;  %1470 = vlog2.f32 %v849_v26  ;;  %v850_v47 = vadd.f32 1.0, %v1461_v25  ;;  %v807_v16 = vsub.f32 0.0, %v791_v11  ;;  %v1894_v26 = vadd.f32 1.0, %v762_v23 }
 0x1e8   : > { %1472 = vlog2.f32 %v847_v34  ;;  %v848_v50 = vadd.f32 1.0, %v1463_v17  ;;  %v835_v13 = vmul.f32 1.442695, %v809_v32  ;;  %v794_v17 = vand.u32 2147483647, %v1888_v8 }
 0x1e9   : > { %1474 = vlog2.f32 %v850_v47  ;;  %v831_v12 = vmul.f32 1.442695, %v807_v16  ;;  %v1402_v1 = vpop.f32.mrb[12].mxu1  ;;  %v1902_v16 = vmul.f32 %v945_v48, %v1779_v55  ;;  %v913_v34 = vmax.f32 %v897_v29, 0.0 }
 0x1ea   : > { %1476 = vlog2.f32 %v848_v50  ;;  %v1897_v43 = vadd.f32 %v1402_v1, %v1768_v44  ;;  %v680_v11 = vpop.f32.mrb[13].mxu1  ;;  %v1910_v23 = vmul.f32 %v943_v51, %v1789_v61  ;;  %v792_v32 = vand.u32 2147483647, %v1891_v54 }
 0x1eb   : > { %1478 = vpow2.f32 %v825_v20  ;;  %v1403_v10 = vpop.f32.mrb[14].mxu1  ;;  %v898_v48 = vsub.f32 0.0, %v1797_v2  ;;  %v810_v20 = vsub.f32 0.0, %v794_v17  ;;  %v911_v19 = vmax.f32 %v895_v18, 0.0 }
 0x1ec   : > { %2209 = vst [vmem:[#allocation8_spill] sm:$0xff] %v1897_v43  ;;  %v1465_v25 = vpop.eup %1464  ;;  %1480 = vpow2.f32 %v835_v13  ;;  %v1913_v47 = vpop.f32.mrb[15].mxu1  ;;  %v808_v1 = vsub.f32 0.0, %v792_v32  ;;  %v797_v29 = vand.u32 2147483647, %v1897_v43  ;;  %v896_v51 = vsub.f32 0.0, %v1804_v7 }
 0x1ed   : > { %v1467_v36 = vpop.eup %1466  ;;  %v853_v55 = vadd.f32 1.0, %v1465_v25  ;;  %1482 = vpow2.f32 %v831_v12  ;;  %v837_v61 = vmul.f32 1.442695, %v810_v20  ;;  %v1924_v12 = vadd.f32 %v1768_v44, %v680_v11 }
 0x1ee   : > { %v851_v50 = vadd.f32 1.0, %v1467_v36  ;;  %v1469_v13 = vpop.eup %1468  ;;  %v833_v57 = vmul.f32 1.442695, %v808_v1  ;;  %v813_v25 = vsub.f32 0.0, %v797_v29  ;;  %v914_v17 = vmax.f32 %v898_v48, 0.0 }
 0x1ef   : > { %1484 = vlog2.f32 %v853_v55  ;;  %v854_v32 = vadd.f32 1.0, %v1469_v13  ;;  %v1927_v36 = vadd.f32 %v1403_v10, %v1768_v44  ;;  %v795_v55 = vand.u32 2147483647, %v1924_v12 }
 0x1f0   : > { %1486 = vlog2.f32 %v851_v50  ;;  %v843_v2 = vmul.f32 1.442695, %v813_v25  ;;  %v912_v1 = vmax.f32 %v896_v51, 0.0  ;;  %v2210_v11 = vsub.f32 1.0, %v1763_v41 }
 0x1f1   : > { %v1471_v18 = vpop.eup %1470  ;;  %1488 = vpow2.f32 %v837_v61  ;;  %v901_v10 = vsub.f32 0.0, %v1824_v31  ;;  %v811_v24 = vsub.f32 0.0, %v795_v55  ;;  %v899_v25 = vsub.f32 0.0, %v1829_v40 }
 0x1f2   : > { %v1473_v39 = vpop.eup %1472  ;;  %v868_v52 = vmul.f32 0.6931472, %v1471_v18  ;;  %1490 = vpow2.f32 %v833_v57  ;;  %v960_v29 = vmul.f32 %v2210_v11, %v1804_v7  ;;  %v798_v37 = vand.u32 2147483647, %v1927_v36 }
 0x1f3   : > { %v1475_v20 = vpop.eup %1474  ;;  %v864_v50 = vmul.f32 0.6931472, %v1473_v39  ;;  %1492 = vlog2.f32 %v854_v32 }
 0x1f4   : > { %v1477_v48 = vpop.eup %1476  ;;  %v929_v61 = vadd.f32 %v913_v34, %v868_v52  ;;  %v870_v13 = vmul.f32 0.6931472, %v1475_v20  ;;  %1494 = vpow2.f32 %v843_v2  ;;  %v839_v20 = vmul.f32 1.442695, %v811_v24 }
 0x1f5   : > { %v1479_v18 = vpop.eup %1478  ;;  %v927_v43 = vadd.f32 %v911_v19, %v864_v50  ;;  %v866_v57 = vmul.f32 0.6931472, %v1477_v48  ;;  %v814_v50 = vsub.f32 0.0, %v798_v37  ;;  %v2212_v24 = vsub.f32 1.0, %v1782_v58 }
 0x1f6   : > { %v1481_v39 = vpop.eup %1480  ;;  %v977_v51 = vmul.f32 %v929_v61, %v1786_v60  ;;  %v930_v27 = vadd.f32 %v914_v17, %v870_v13  ;;  %v852_v41 = vadd.f32 1.0, %v1479_v18  ;;  %v2211_v17 = vsub.f32 1.0, %v1776_v53 }
 0x1f7   : > { %v1483_v7 = vpop.eup %1482  ;;  %v975_v34 = vmul.f32 %v927_v43, %v1835_v49  ;;  %v928_v32 = vadd.f32 %v912_v1, %v866_v57  ;;  %v857_v52 = vadd.f32 1.0, %v1481_v39  ;;  %v915_v43 = vmax.f32 %v899_v25, 0.0 }
 0x1f8   : > { %v978_v55 = vmul.f32 %v930_v27, %v1848_v5  ;;  %1496 = vlog2.f32 %v852_v41  ;;  %v855_v19 = vadd.f32 1.0, %v1483_v7  ;;  %v1946_v2 = vmul.f32 %v2211_v17, %v1824_v31 }
 0x1f9   : > { %v1485_v11 = vpop.eup %1484  ;;  %v1940_v48 = vadd.f32 %v975_v34, %v1910_v23  ;;  %v976_v60 = vmul.f32 %v928_v32, %v1850_v6  ;;  %1498 = vlog2.f32 %v857_v52  ;;  %v963_v27 = vmul.f32 %v2212_v24, %v1829_v40 }
 0x1fa   : > { %v1487_v49 = vpop.eup %1486  ;;  %v902_v37 = vsub.f32 0.0, %v1841_v62  ;;  %1500 = vlog2.f32 %v855_v19  ;;  %v1953_v23 = vadd.f32 %v977_v51, %v1902_v16  ;;  %v1958_v31 = vadd.f32 %v978_v55, %v1920_v38 }
 0x1fb   : > { %v1489_v5 = vpop.eup %1488  ;;  %v1955_v6 = vadd.f32 %v976_v60, %v960_v29  ;;  %v872_v1 = vmul.f32 0.6931472, %v1487_v49  ;;  %1502 = vpow2.f32 %v839_v20  ;;  %v876_v61 = vmul.f32 0.6931472, %v1485_v11 }
 0x1fc   : > { %v1491_v53 = vpop.eup %1490  ;;  %v858_v13 = vadd.f32 1.0, %v1489_v5  ;;  %v845_v18 = vmul.f32 1.442695, %v814_v50  ;;  %v1008_v40 = vsel %vm1007_vm2, %v1940_v48, 0.0  ;;  %v917_v39 = vmax.f32 %v901_v10, 0.0 }
 0x1fd   : > { %v1493_v58 = vpop.eup %1492  ;;  %v1009_v57 = vsel %vm1007_vm2, %v1955_v6, 0.0  ;;  %v931_v16 = vadd.f32 %v915_v43, %v872_v1  ;;  %v856_v25 = vadd.f32 1.0, %v1491_v53  ;;  %v900_v51 = vsub.f32 0.0, %v1846_v3 }
 0x1fe   : > { %v1010_v29 = vadd.f32 %v1009_v57, %v1008_v40  ;;  %1504 = vlog2.f32 %v858_v13  ;;  %v1011_v38 = vsel %vm1007_vm2, %v1953_v23, 0.0  ;;  %v878_v7 = vmul.f32 0.6931472, %v1493_v58  ;;  %v1495_v34 = vpop.eup %1494 }
 0x1ff   : > { %v979_v41 = vmul.f32 %v931_v16, %v1859_v22  ;;  %1506 = vlog2.f32 %v856_v25  ;;  %v933_v52 = vadd.f32 %v917_v39, %v876_v61  ;;  %v903_v20 = vsub.f32 0.0, %v1872_v45 }
 0x200   : > { %v1012_v32 = vadd.f32 %v1011_v38, %v1010_v29  ;;  %1508 = vpow2.f32 %v845_v18  ;;  %v1013_v55 = vsel %vm1007_vm2, %v1958_v31, 0.0  ;;  %v918_v19 = vmax.f32 %v902_v37, 0.0 }
 0x201   : > { %v1971_v10 = vadd.f32 %v979_v41, %v963_v27  ;;  %v1975_v50 = vadd.f32 %v1768_v44, %v1913_v47  ;;  %v2213_v60 = vsub.f32 1.0, %v1784_v59  ;;  %v916_v49 = vmax.f32 %v900_v51, 0.0 }
 0x202   : > { %v1497_v11 = vpop.eup %1496  ;;  %v1014_v22 = vadd.f32 %v1013_v55, %v1012_v32  ;;  %v905_v43 = vsub.f32 0.0, %v1867_v33  ;;  %v934_v27 = vadd.f32 %v918_v19, %v878_v7  ;;  %v981_v44 = vmul.f32 %v933_v52, %v1854_v14 }
 0x203   : > { %v966_v17 = vmul.f32 %v2213_v60, %v1841_v62  ;;  %v1499_v24 = vpop.eup %1498  ;;  %v1015_v5 = vsel %vm1007_vm2, %v1971_v10, 0.0  ;;  %v874_v1 = vmul.f32 0.6931472, %v1497_v11  ;;  %v796_v37 = vand.u32 2147483647, %v1975_v50 }
 0x204   : > { %v1501_v53 = vpop.eup %1500  ;;  %v1016_v47 = vadd.f32 %v1015_v5, %v1014_v22  ;;  %v919_v61 = vmax.f32 %v903_v20, 0.0  ;;  %v906_v13 = vsub.f32 0.0, %v1888_v8  ;;  %v884_v18 = vmul.f32 0.6931472, %v1499_v24 }
 0x205   : > { %v1503_v59 = vpop.eup %1502  ;;  %v932_v62 = vadd.f32 %v916_v49, %v874_v1  ;;  %v880_v58 = vmul.f32 0.6931472, %v1501_v53  ;;  %v812_v40 = vsub.f32 0.0, %v796_v37  ;;  %v2214_v57 = vsub.f32 1.0, %v1791_v63 }
 0x206   : > { %v921_v25 = vmax.f32 %v905_v43, 0.0  ;;  %v904_v29 = vsub.f32 0.0, %v1891_v54  ;;  %v859_v39 = vadd.f32 1.0, %v1503_v59  ;;  %v982_v51 = vmul.f32 %v934_v27, %v1864_v30 }
 0x207   : > { %v964_v16 = vmul.f32 %v2214_v57, %v1846_v3  ;;  %v980_v14 = vmul.f32 %v932_v62, %v1869_v42  ;;  %v935_v38 = vadd.f32 %v919_v61, %v880_v58  ;;  %v841_v41 = vmul.f32 1.442695, %v812_v40 }
 0x208   : > { %v1505_v7 = vpop.eup %1504  ;;  %v1993_v32 = vadd.f32 %v981_v44, %v1946_v2  ;;  %v2215_v52 = vsub.f32 1.0, %v1799_v4  ;;  %v922_v63 = vmax.f32 %v906_v13, 0.0  ;;  %1510 = vlog2.f32 %v859_v39 }
 0x209   : > { %v1507_v3 = vpop.eup %1506  ;;  %v1998_v55 = vadd.f32 %v980_v14, %v964_v16  ;;  %v937_v19 = vadd.f32 %v921_v25, %v884_v18  ;;  %v983_v30 = vmul.f32 %v935_v38, %v1879_v28  ;;  %v886_v11 = vmul.f32 0.6931472, %v1505_v7 }
 0x20a   : > { %v967_v20 = vmul.f32 %v2215_v52, %v1872_v45  ;;  %v1509_v42 = vpop.eup %1508  ;;  %v882_v22 = vmul.f32 0.6931472, %v1507_v3  ;;  %v920_v60 = vmax.f32 %v904_v29, 0.0  ;;  %v861_v49 = vadd.f32 1.0, %v1495_v34 }
 0x20b   : > { %1512 = vpow2.f32 %v841_v41  ;;  %v2001_v2 = vadd.f32 %v982_v51, %v966_v17  ;;  %v1017_v4 = vsel %vm1007_vm2, %v1998_v55, 0.0  ;;  %v938_v43 = vadd.f32 %v922_v63, %v886_v11  ;;  %v2218_v41 = vld [vmem:[#allocation6_spill] sm:$0xff] }
 0x20c   : > { %v2005_v45 = vadd.f32 %v983_v30, %v967_v20  ;;  %v1018_v24 = vadd.f32 %v1017_v4, %v1016_v47  ;;  %v954_v5 = vsub.f32 1.0, %v1816_v21  ;;  %v936_v27 = vadd.f32 %v920_v60, %v882_v22  ;;  %v2219_v20 = vld [vmem:[#allocation7_spill] sm:$0xff]  ;;  %v2220_v60 = vld [vmem:[#allocation8_spill] sm:$0xff] }
 0x20d   : > { %v763_v28 = vmul.f32 %v1753_v35, %v1877_v15  ;;  %v1019_v1 = vsel %vm1007_vm2, %v1993_v32, 0.0  ;;  %v2216_v34 = vsub.f32 1.0, %v1793_v0  ;;  %v985_v37 = vmul.f32 %v937_v19, %v1874_v56 }
 0x20e   : > { %v862_v53 = vadd.f32 1.0, %v1509_v42  ;;  %v1020_v44 = vadd.f32 %v1019_v1, %v1018_v24  ;;  %v2217_v47 = vsub.f32 1.0, %v1807_v9  ;;  %v984_v21 = vmul.f32 %v936_v27, %v1905_v46 }
 0x20f   : > { %v969_v17 = vmul.f32 %v2216_v34, %v1867_v33  ;;  %v907_v13 = vsub.f32 0.0, %v1924_v12  ;;  %v1021_v59 = vsel %vm1007_vm2, %v2001_v2, 0.0  ;;  %v1023_v62 = vsel %vm1007_vm2, %v2005_v45, 0.0 }
 0x210   : > { %v968_v61 = vmul.f32 %v2217_v47, %v1891_v54  ;;  %v986_v0 = vmul.f32 %v938_v43, %v1894_v26  ;;  %1514 = vlog2.f32 %v861_v49  ;;  %v1022_v33 = vadd.f32 %v1021_v59, %v1020_v44 }
 0x211   : > { %v2028_v18 = vadd.f32 %v985_v37, %v969_v17  ;;  %v970_v9 = vmul.f32 %v954_v5, %v1888_v8  ;;  %1516 = vlog2.f32 %v862_v53  ;;  %v955_v40 = vsub.f32 1.0, %v1877_v15 }
 0x212   : > { %v2026_v56 = vadd.f32 %v984_v21, %v968_v61  ;;  %v1511_v54 = vpop.eup %1510  ;;  %v1024_v46 = vadd.f32 %v1023_v62, %v1022_v33  ;;  %v779_v16 = vadd.f32 1.0, %v763_v28  ;;  %v923_v25 = vmax.f32 %v907_v13, 0.0 }
 0x213   : > { %v2034_v57 = vadd.f32 %v986_v0, %v970_v9  ;;  %v888_v26 = vmul.f32 0.6931472, %v1511_v54  ;;  %v1027_v51 = vsel %vm1007_vm2, %v2028_v18, 0.0  ;;  %v1336_v7 = vunpack.c.2.s8 %v2218_v41 }
 0x214   : > { %v1025_v58 = vsel %vm1007_vm2, %v2026_v56, 0.0  ;;  %v1337_v52 = vunpack.c.3.s8 %v2218_v41  ;;  %v1333_v63 = vunpack.c.3.s8 %v2219_v20  ;;  %v971_v3 = vmul.f32 %v955_v40, %v1924_v12 }
 0x215   : > { %v1513_v29 = vpop.eup %1512  ;;  %v1026_v39 = vadd.f32 %v1025_v58, %v1024_v46  ;;  %v939_v14 = vadd.f32 %v923_v25, %v888_v26  ;;  %v1029_v15 = vsel %vm1007_vm2, %v2034_v57, 0.0  ;;  %v741_v22 = vcvt.s32.f32 %v1336_v7 }
 0x216   : > { %v860_v8 = vadd.f32 1.0, %v1513_v29  ;;  %v909_v49 = vsub.f32 0.0, %v2220_v60  ;;  %v742_v24 = vcvt.s32.f32 %v1337_v52  ;;  %v740_v5 = vcvt.s32.f32 %v1333_v63 }
 0x217   : > { %v1028_v38 = vadd.f32 %v1027_v51, %v1026_v39  ;;  %v987_v19 = vmul.f32 %v939_v14, %v779_v16  ;;  %v765_v27 = vmul.f32 %v1753_v35, %v741_v22  ;;  %v910_v12 = vsub.f32 0.0, %v1927_v36 }
 0x218   : > { %1518 = vlog2.f32 %v860_v8  ;;  %v766_v34 = vmul.f32 %v1753_v35, %v742_v24  ;;  %v925_v17 = vmax.f32 %v909_v49, 0.0  ;;  %v764_v53 = vmul.f32 %v1753_v35, %v740_v5 }
 0x219   : > { %v1030_v30 = vadd.f32 %v1029_v15, %v1028_v38  ;;  %v2044_v42 = vadd.f32 %v987_v19, %v971_v3  ;;  %v908_v44 = vsub.f32 0.0, %v1975_v50  ;;  %v781_v47 = vadd.f32 1.0, %v765_v27 }
 0x21a   : > { %v1515_v11 = vpop.eup %1514  ;;  %v926_v21 = vmax.f32 %v910_v12, 0.0  ;;  %v957_v59 = vsub.f32 1.0, %v741_v22  ;;  %v782_v62 = vadd.f32 1.0, %v766_v34  ;;  %v956_v0 = vsub.f32 1.0, %v740_v5 }
 0x21b   : > { %v1517_v4 = vpop.eup %1516  ;;  %v1031_v43 = vsel %vm1007_vm2, %v2044_v42, 0.0  ;;  %v892_v28 = vmul.f32 0.6931472, %v1515_v11  ;;  %v780_v9 = vadd.f32 1.0, %v764_v53  ;;  %v924_v46 = vmax.f32 %v908_v44, 0.0  ;;  %v2221_v11 = vld [vmem:[#allocation5_spill] sm:$0xff] (!%p1301_p11) }
 0x21c   : > { %v1032_v1 = vadd.f32 %v1031_v43, %v1030_v30  ;;  %v894_v37 = vmul.f32 0.6931472, %v1517_v4  ;;  %v958_v40 = vsub.f32 1.0, %v742_v24  ;;  %v973_v26 = vmul.f32 %v957_v59, %v2220_v60 }
 0x21d   : > { %v941_v61 = vadd.f32 %v925_v17, %v892_v28  ;;  %v972_v35 = vmul.f32 %v956_v0, %v1975_v50  ;;  %v1053_v22 = vadd.s32 (!%p1301_p11), 8, %v2221_v11  ;;  %v1054_v60 = vadd.s32 (!%p1301_p11), 16, %v2221_v11 }
 0x21e   : > { %v942_v33 = vadd.f32 %v926_v21, %v894_v37  ;;  %v974_v51 = vmul.f32 %v958_v40, %v1927_v36  ;;  %v2080_v49 = vstv (!%p1301_p11), %s1302_s17  ;;  %v1055_v4 = vadd.s32 (!%p1301_p11), 24, %v2221_v11 }
 0x21f   : > { %v989_v58 = vmul.f32 %v941_v61, %v781_v47  ;;  %v1056_v43 = vadd.s32 (!%p1301_p11), 32, %v2221_v11  ;;  %v1070_v24 = vadd.s32 (!%p1301_p11), %v2080_v49, %v2221_v11  ;;  %v1071_v5 = vadd.s32 (!%p1301_p11), %v2080_v49, %v1053_v22 }
 0x220   : > { %v990_v25 = vmul.f32 %v942_v33, %v782_v62  ;;  %v1072_v27 = vadd.s32 (!%p1301_p11), %v2080_v49, %v1054_v60  ;;  %v1057_v28 = vadd.s32 (!%p1301_p11), 40, %v2221_v11  ;;  %v1058_v12 = vadd.s32 (!%p1301_p11), 48, %v2221_v11 }
 0x221   : > { %v2056_v39 = vadd.f32 %v989_v58, %v973_v26  ;;  %v1074_v34 = vadd.s32 (!%p1301_p11), %v2080_v49, %v1056_v43  ;;  %vm1086_vm4 = vcmp.lt.s32.totalorder (!%p1301_p11), %v1070_v24, 300  ;;  %vm1087_vm5 = vcmp.lt.s32.totalorder (!%p1301_p11), %v1071_v5, 300 }
 0x222   : > { %v1519_v13 = vpop.eup %1518  ;;  %v2061_v8 = vadd.f32 %v990_v25, %v974_v51  ;;  %vm1088_vm6 = vcmp.lt.s32.totalorder (!%p1301_p11), %v1072_v27, 300  ;;  %v1059_v17 = vadd.s32 (!%p1301_p11), 56, %v2221_v11  ;;  %v1075_v37 = vadd.s32 (!%p1301_p11), %v2080_v49, %v1057_v28 }
 0x223   : > { %v890_v54 = vmul.f32 0.6931472, %v1519_v13  ;;  %v1035_v7 = vsel %vm1007_vm2, %v2056_v39, 0.0  ;;  %v1134_v53 = vsel (!%p1301_p11), %vm1086_vm4, %v1940_v48, 0.0  ;;  %v1135_v44 = vsel (!%p1301_p11), %vm1087_vm5, %v1955_v6, 0.0 }
 0x224   : > { %v1037_v50 = vsel %vm1007_vm2, %v2061_v8, 0.0  ;;  %v1136_v47 = vsel (!%p1301_p11), %vm1088_vm6, %v1953_v23, 0.0  ;;  %v1060_v61 = vadd.s32 (!%p1301_p11), 64, %v2221_v11  ;;  %v1076_v21 = vadd.s32 (!%p1301_p11), %v2080_v49, %v1058_v12 }
 0x225   : > { %v940_v16 = vadd.f32 %v924_v46, %v890_v54  ;;  %vm1090_vm8 = vcmp.lt.s32.totalorder (!%p1301_p11), %v1074_v34, 300  ;;  %v1061_v13 = vadd.s32 (!%p1301_p11), 72, %v2221_v11  ;;  %v1077_v59 = vadd.s32 (!%p1301_p11), %v2080_v49, %v1059_v17 }
 0x226   : > { %vm1091_vm9 = vcmp.lt.s32.totalorder (!%p1301_p11), %v1075_v37, 300  ;;  %v1150_v0 = vsel (!%p1301_p11), %vm1007_vm2, %v1134_v53, 0.0  ;;  %v1151_v48 = vsel (!%p1301_p11), %vm1007_vm2, %v1135_v44, 0.0  ;;  %v1153_v6 = vsel (!%p1301_p11), %vm1007_vm2, %v1136_v47, 0.0 }
 0x227   : > { %v988_v29 = vmul.f32 %v940_v16, %v780_v9  ;;  %v1138_v23 = vsel (!%p1301_p11), %vm1090_vm8, %v1971_v10, 0.0  ;;  %v1152_v33 = vadd.f32 (!%p1301_p11), %v1151_v48, %v1150_v0  ;;  %v1062_v9 = vadd.s32 (!%p1301_p11), 80, %v2221_v11 }
 0x228   : > { %v1078_v54 = vadd.s32 (!%p1301_p11), %v2080_v49, %v1060_v61  ;;  %vm1092_vm10 = vcmp.lt.s32.totalorder (!%p1301_p11), %v1076_v21, 300  ;;  %v1139_v58 = vsel (!%p1301_p11), %vm1091_vm9, %v1998_v55, 0.0  ;;  %v1063_v40 = vadd.s32 (!%p1301_p11), 88, %v2221_v11 }
 0x229   : > { %v2059_v14 = vadd.f32 %v988_v29, %v972_v35  ;;  %v1079_v16 = vadd.s32 (!%p1301_p11), %v2080_v49, %v1061_v13  ;;  %vm1093_vm11 = vcmp.lt.s32.totalorder (!%p1301_p11), %v1077_v59, 300  ;;  %v1157_v26 = vsel (!%p1301_p11), %vm1007_vm2, %v1138_v23, 0.0 }
 0x22a   : > { %v1140_v10 = vsel (!%p1301_p11), %vm1092_vm10, %v1993_v32, 0.0  ;;  %v1064_v35 = vadd.s32 (!%p1301_p11), 96, %v2221_v11  ;;  %v1080_v29 = vadd.s32 (!%p1301_p11), %v2080_v49, %v1062_v9  ;;  %vm1094_vm12 = vcmp.lt.s32.totalorder (!%p1301_p11), %v1078_v54, 300 }
 0x22b   : > { %v1033_v38 = vsel %vm1007_vm2, %v2059_v14, 0.0  ;;  %v1159_v51 = vsel (!%p1301_p11), %vm1007_vm2, %v1139_v58, 0.0  ;;  %v1141_v55 = vsel (!%p1301_p11), %vm1093_vm11, %v2001_v2, 0.0  ;;  %vm1095_vm13 = vcmp.lt.s32.totalorder (!%p1301_p11), %v1079_v16, 300 }
 0x22c   : > { %v1034_v41 = vadd.f32 %v1033_v38, %v1032_v1  ;;  %v1073_v1 = vadd.s32 (!%p1301_p11), %v2080_v49, %v1055_v4  ;;  %v1142_v32 = vsel (!%p1301_p11), %vm1094_vm12, %v2005_v45, 0.0  ;;  %vm1096_vm14 = vcmp.lt.s32.totalorder (!%p1301_p11), %v1080_v29, 300 }
 0x22d   : > { %v1143_v2 = vsel (!%p1301_p11), %vm1095_vm13, %v2026_v56, 0.0  ;;  %v1144_v45 = vsel (!%p1301_p11), %vm1096_vm14, %v2028_v18, 0.0 }
 0x22e   : > { %v1036_v52 = vadd.f32 %v1035_v7, %v1034_v41  ;;  %vm1089_vm7 = vcmp.lt.s32.totalorder (!%p1301_p11), %v1073_v1, 300  ;;  %v1065_v41 = vadd.s32 (!%p1301_p11), 104, %v2221_v11  ;;  %v1081_v7 = vadd.s32 (!%p1301_p11), %v2080_v49, %v1063_v40 }
 0x22f   : > { %v1137_v62 = vsel (!%p1301_p11), %vm1089_vm7, %v1958_v31, 0.0  ;;  %v1154_v31 = vadd.f32 (!%p1301_p11), %v1153_v6, %v1152_v33  ;;  %v1167_v4 = vsel (!%p1301_p11), %vm1007_vm2, %v1143_v2, 0.0 }
 0x230   : > { %v1038_v20 = vadd.f32 %v1037_v50, %v1036_v52  ;;  %v1155_v46 = vsel (!%p1301_p11), %vm1007_vm2, %v1137_v62, 0.0  ;;  %v1161_v52 = vsel (!%p1301_p11), %vm1007_vm2, %v1140_v10, 0.0  ;;  %vm1097_vm15 = vcmp.lt.s32.totalorder (!%p1301_p11), %v1081_v7, 300 }
 0x231   : > { %v1156_v25 = vadd.f32 (!%p1301_p11), %v1155_v46, %v1154_v31  ;;  %v1145_v43 = vsel (!%p1301_p11), %vm1097_vm15, %v2034_v57, 0.0 }
 0x232   : > { %v1039_v63 = vrot.slane %v1038_v20, 4  ;;  %v1171_v18 = vsel (!%p1301_p11), %vm1007_vm2, %v1145_v43, 0.0 }
 0x233   : > { %v1158_v38 = vadd.f32 (!%p1301_p11), %v1157_v26, %v1156_v25 }
 0x234   : > { %v1040_v15 = vadd.f32 %v1039_v63, %v1038_v20  ;;  %v1066_v20 = vadd.s32 (!%p1301_p11), 112, %v2221_v11  ;;  %v1082_v63 = vadd.s32 (!%p1301_p11), %v2080_v49, %v1064_v35 }
 0x235   : > { %v1160_v50 = vadd.f32 (!%p1301_p11), %v1159_v51, %v1158_v38 }
 0x236   : > { %v1041_v36 = vrot.slane %v1040_v15, 2  ;;  %v1084_v60 = vadd.s32 (!%p1301_p11), %v2080_v49, %v1066_v20  ;;  %vm1098_vm0 = vcmp.lt.s32.totalorder (!%p1301_p11), %v1082_v63, 300 }
 0x237   : > { %v1146_v5 = vsel (!%p1301_p11), %vm1098_vm0, %v2044_v42, 0.0 }
 0x238   : > { %v1042_v3 = vadd.f32 %v1041_v36, %v1040_v15  ;;  %1050 = sbr.rel (%p1301_p11) target bundleno = 604 (0x25c), region = 52  ;;  %v1163_v15 = vsel (!%p1301_p11), %vm1007_vm2, %v1141_v55, 0.0  ;;  %v1162_v36 = vadd.f32 (!%p1301_p11), %v1161_v52, %v1160_v50  ;;  %vm1100_vm4 = vcmp.lt.s32.totalorder (!%p1301_p11), %v1084_v60, 300 }
 0x239   : > { %v1173_v12 = vsel (!%p1301_p11), %vm1007_vm2, %v1146_v5, 0.0  ;;  %v1148_v57 = vsel (!%p1301_p11), %vm1100_vm4, %v2056_v39, 0.0 }
 0x23a   : > { %v1043_v19 = vrot.slane %v1042_v3, 1  ;;  %v1164_v22 = vadd.f32 (!%p1301_p11), %v1163_v15, %v1162_v36  ;;  %v1177_v42 = vsel (!%p1301_p11), %vm1007_vm2, %v1148_v57, 0.0 }
 0x23c   : > { %v1044_v30 = vadd.f32 %v1043_v19, %v1042_v3  ;;  %v1067_v3 = vadd.s32 (!%p1301_p11), 120, %v2221_v11  ;;  %v1083_v19 = vadd.s32 (!%p1301_p11), %v2080_v49, %v1065_v41  ;;  %v1169_v11 = vsel (!%p1301_p11), %vm1007_vm2, %v1144_v45, 0.0 }
 0x23e   : > { %1046 = vst.msk [vmem:[%s2072_s16] sm:$0x1] %vm1045_vm3, %v1044_v30  ;;  %v1165_v30 = vsel (!%p1301_p11), %vm1007_vm2, %v1142_v32, 0.0  ;;  %v1085_v56 = vadd.s32 (!%p1301_p11), %v2080_v49, %v1067_v3  ;;  %vm1099_vm1 = vcmp.lt.s32.totalorder (!%p1301_p11), %v1083_v19, 300 }
 0x23f   : > { %v1166_v24 = vadd.f32 %v1165_v30, %v1164_v22  ;;  %v1147_v28 = vsel %vm1099_vm1, %v2059_v14, 0.0 }
 0x240   : > { %vm1101_vm5 = vcmp.lt.s32.totalorder %v1085_v56, 300  ;;  %v1175_v49 = vsel %vm1007_vm2, %v1147_v28, 0.0 }
 0x241   : > { %v1168_v27 = vadd.f32 %v1167_v4, %v1166_v24  ;;  %v1149_v17 = vsel %vm1101_vm5, %v2061_v8, 0.0 }
 0x242   : > { %v1179_v44 = vsel %vm1007_vm2, %v1149_v17, 0.0 }
 0x243   : > { %v1170_v1 = vadd.f32 %v1169_v11, %v1168_v27 }
 0x245   : > { %v1172_v34 = vadd.f32 %v1171_v18, %v1170_v1 }
 0x247   : > { %v1174_v37 = vadd.f32 %v1173_v12, %v1172_v34 }
 0x249   : > { %v1176_v53 = vadd.f32 %v1175_v49, %v1174_v37 }
 0x24b   : > { %v1178_v47 = vadd.f32 %v1177_v42, %v1176_v53 }
 0x24d   : > { %v1180_v14 = vadd.f32 %v1179_v44, %v1178_v47 }
 0x24f   : > { %v1181_v61 = vrot.slane %v1180_v14, 4 }
 0x251   : > { %v1182_v21 = vadd.f32 %v1181_v61, %v1180_v14 }
 0x253   : > { %v1183_v13 = vrot.slane %v1182_v21, 2 }
 0x255   : > { %v1184_v59 = vadd.f32 %v1183_v13, %v1182_v21 }
 0x257   : > { %v1185_v62 = vrot.slane %v1184_v59, 1 }
 0x259   : > { %v1186_v39 = vadd.f32 %v1185_v62, %v1184_v59 }
 0x25b   : > { %1187 = vst.msk [vmem:[%s2072_s16] sm:$0x1] %vm1045_vm3, %v1186_v39 }
 0x25c PF: > { %s2150_s19 = scalar_lea.hbm %s2196_s7, %s1677_s15  ;;  %s1201_s21 = sshll.u32 %s2072_s16, 4  ;;  %s1202_s21 = int_to_ptr.vmem [resolvable:$true] %s1201_s21 }
 0x25d   : > { %s1189_s22 = scalar_lea.sflag [#allocation3], %s310_s14  ;;  %s1520_s23 = scalar_lea.vmem %s1202_s21, 16 }
 0x25e   : > { %p1521_p12 = scmp.ne.s32.totalorder %s1202_s21, %s1520_s23  ;;  %s1584_s29 = smov [#allocation2]  }
 0x25f   : > { %s1524_s8 = sshll.u32 %s1584_s29, 4  ;;  %s1525_s8 = int_to_ptr.vmem [resolvable:$false] %s1524_s8 }
 0x260   : > { %p1522_p13 = pnand %p1521_p12, %p1663_p5  ;;  %s1526_s9 = scalar_lea.vmem %s1525_s8, 32 }
 0x261   : > { %p1527_p1 = scmp.lt.s32.totalorder %s1202_s21, %s1525_s8  ;;  %p1528_p2 = scmp.lt.s32.totalorder %s1526_s9, %s1520_s23 }
 0x262   : > { %p1523_p0 = pneg %p1522_p13 }
 0x263   : > { %p1529_p3 = por %p1528_p2, %p1527_p1 }
 0x265   : > { %p1530_p4 = pnand %p1529_p3, %p1523_p0 }
 0x267   : > { %1533 = shalt.err (!%p1530_p4)
}
 0x268   : > { %s1534_s15 = scalar_lea.hbm %s2150_s19, 16  ;;  %s1538_s14 = scalar_lea.hbm %s2196_s7, 48 }
 0x269   : > { %p1535_p7 = scmp.ne.s32.totalorder %s2150_s19, %s1534_s15  ;;  %p1539_p10 = scmp.lt.u32.totalorder %s2150_s19, %s2196_s7 }
 0x26a   : > { %p1540_p11 = scmp.lt.u32.totalorder %s1538_s14, %s1534_s15  ;;  %p1542_p13 = scmp.lt.u32.totalorder %s1534_s15, %s2150_s19 }
 0x26b   : > { %p1536_p8 = pnand %p1535_p7, %p1663_p5 }
 0x26c   : > { %p1541_p12 = por %p1540_p11, %p1539_p10 }
 0x26d   : > { %p1537_p9 = pneg %p1536_p8 }
 0x26e   : > { %p1543_p0 = por %p1542_p13, %p1541_p12 }
 0x270   : > { %p1544_p1 = pnand %p1543_p0, %p1537_p9 }
 0x272   : > { %1547 = shalt.err (!%p1544_p1)
}
 0x273   : > { %1411 = dma.vmem_to_hbm [thread:$0]  (%p1663_p5), %s1202_s21, 16, %s2150_s19, %s1189_s22  }
 0x274 PF: > { %p1417_p2 = scmp.ge.s32.totalorder %s1582_s27, 2  ;;  %s1213_s28 = sand.u32 1, %s1570_s24  }
 0x275   : > { %s1214_s18 = scalar_lea.sflag [#allocation3], %s1213_s28 }
 0x276   : > { %p1414_p3 = pnand %p1417_p2, %p1667_p6 }
 0x278   : > { %1565 = dma.done.wait (!%p1414_p3), %s1214_s18, 16  }
 0x279   : > { %1567 = vsyncadd (!%p1414_p3), %s1214_s18, 4294967280  ;;  %p17_p4 = scmp.ge.s32.totalorder %s1650_s30, 5   ;;  %s2222_s24 = smov %s1574_s25 }
 0x27a   : > { %s2223_s25 = smov %s1578_s26  ;;  %s2224_s26 = smov %s1661_s10 }
 0x27b   : > { %s2225_s27 = smov %s1650_s30  ;;  %19 = sbr.rel (!%p17_p4) target bundleno = 3 (0x3), region = 90 }
 0x282   :  { %1218 = vsyncpa [#allocation3], 1 }
 0x283   :  { %1220 = vsyncpa [#allocation3 + $0x1], 1 }

</bundles_post_ra>
